<compile_context>
chip_gen: v7x
topology: tpu7x:2x2x1
jax: 0.10.0
libtpu: 0.0.40
codegen_flags: <defaults>
</compile_context>

<pallas_src>
import functools
import math

import jax
import jax.numpy as jnp
from jax.experimental import pallas as pl
from jax.experimental.pallas import tpu as pltpu


# ---------------------------------------------------------------------------
# helpers
# ---------------------------------------------------------------------------
def _round_up(x, m):
    return ((x + m - 1) // m) * m


def _cdiv(a, b):
    return -(-a // b)


# ---------------------------------------------------------------------------
# Tiled linear (bias) kernels: y = x @ w + b
# ---------------------------------------------------------------------------
def _linear_kernel_f32(x_ref, w_ref, b_ref, o_ref):
    """f32 output: accumulate directly into o_ref (resident across the K axis)."""
    k = pl.program_id(2)

    @pl.when(k == 0)
    def _init():
        o_ref[...] = jnp.broadcast_to(b_ref[...].astype(o_ref.dtype), o_ref.shape)

    o_ref[...] += jnp.dot(
        x_ref[...].astype(jnp.bfloat16),
        w_ref[...].astype(jnp.bfloat16),
        preferred_element_type=jnp.float32,
    )


def _linear_kernel_acc(x_ref, w_ref, b_ref, o_ref, acc_ref):
    """Low-precision output: keep an f32 VMEM accumulator, cast only at the store."""
    k = pl.program_id(2)

    @pl.when(k == 0)
    def _init():
        acc_ref[...] = jnp.zeros_like(acc_ref)

    acc_ref[...] += jnp.dot(
        x_ref[...].astype(jnp.bfloat16),
        w_ref[...].astype(jnp.bfloat16),
        preferred_element_type=jnp.float32,
    )

    @pl.when(k == pl.num_programs(2) - 1)
    def _store():
        o_ref[...] = (acc_ref[...] + b_ref[...].astype(jnp.float32)).astype(o_ref.dtype)


def linear_pallas(x2d, w, b, *, tm=512, tn=512, tk=512):
    """y = x2d @ w + b   (x2d: (M, K), w: (K, N), b: (N,)). bf16 MXU, f32 accumulation."""
    M, K = x2d.shape
    N = w.shape[1]
    out_dtype = x2d.dtype

    # N (lane) tile: single full-width block when it fits; otherwise 128-multiple tiles
    # with a Pallas-masked tail (no weight padding, no output slicing).
    tn = N if N <= tn else tn

    # M (sublane) tile: never pad/copy the activation; the tail M block is masked.
    tm = M if M <= tm else tm

    # K (contraction) tile must divide K exactly (tail garbage would corrupt outputs).
    xp, wp = x2d, w
    if K <= tk:
        tk = K
    else:
        cand = 0
        for c in range(tk - tk % 128, 127, -128):
            if K % c == 0:
                cand = c
                break
        if cand:
            tk = cand
        else:
            # Awkward K (>512, not a multiple of 128): zero-pad the contraction dim.
            # Real HieraDet dims (<=768, multiples of 128 when large) never hit this.
            kp = _round_up(K, 128)
            xp = jnp.pad(x2d, ((0, 0), (0, kp - K)))
            wp = jnp.pad(w, ((0, kp - K), (0, 0)))
            K = kp
            tk = 128

    grid_m, grid_n = _cdiv(M, tm), _cdiv(N, tn)
    # Feed both v7x TensorCores: at least 2 blocks over the parallel axes (cheap; only
    # triggers for tiny problems). Keep tm a multiple of 8 after halving.
    while grid_m * grid_n < 2 and tm % 16 == 0 and tm >= 32:
        tm //= 2
        grid_m = _cdiv(M, tm)
    grid_k = K // tk

    bp = b.reshape(1, N)

    if out_dtype == jnp.float32:
        kernel = _linear_kernel_f32
        scratch = []
    else:
        kernel = _linear_kernel_acc
        scratch = [pltpu.VMEM((tm, tn), jnp.float32)]

    return pl.pallas_call(
        kernel,
        out_shape=jax.ShapeDtypeStruct((M, N), out_dtype),
        grid=(grid_m, grid_n, grid_k),
        in_specs=[
            pl.BlockSpec((tm, tk), lambda i, j, k: (i, k)),
            pl.BlockSpec((tk, tn), lambda i, j, k: (k, j)),
            pl.BlockSpec((1, tn), lambda i, j, k: (0, j)),
        ],
        out_specs=pl.BlockSpec((tm, tn), lambda i, j, k: (i, j)),
        scratch_shapes=scratch,
        compiler_params=pltpu.CompilerParams(
            dimension_semantics=("parallel", "parallel", "arbitrary"),
        ),
    )(xp, wp, bp)


# ---------------------------------------------------------------------------
# Flash-style attention kernel (all heads of one batch element per grid step)
# ---------------------------------------------------------------------------
def _attn_kernel(q_ref, k_ref, v_ref, o_ref, m_sc, l_sc, acc_sc, *,
                 num_heads, head_dim, kv_len, block_kv, needs_kv_mask):
    # q_ref: (tq, nH, hd)   k_ref/v_ref: (tk, nH, hd)   o_ref: (tq, nH*hd)
    # scratch (head-major, lane-0 aligned): m_sc/l_sc: (nH, tq, 1) f32, acc_sc: (nH, tq, hd) f32
    kv = pl.program_id(2)

    @pl.when(kv == 0)
    def _init():
        m_sc[...] = jnp.full_like(m_sc, -jnp.inf)
        l_sc[...] = jnp.zeros_like(l_sc)
        acc_sc[...] = jnp.zeros_like(acc_sc)

    if needs_kv_mask:
        kv0 = kv * block_kv
        row_mask = (kv0 + jax.lax.broadcasted_iota(jnp.int32, (1, block_kv), 1)) < kv_len
        col_mask = (kv0 + jax.lax.broadcasted_iota(jnp.int32, (block_kv, 1), 0)) < kv_len

    # TODO(synk): for deeper HieraDet stages (num_heads 4-8), switch this static unroll to
    # lax.fori_loop over heads (head-major scratch + pl.ds makes that trivial) if the
    # bundle dump shows vreg spills.
    for h in range(num_heads):
        # 1/sqrt(head_dim) is folded into the qkv weights, so q needs no rescale here.
        qh = q_ref[:, h, :].astype(jnp.bfloat16)          # (tq, hd)
        kh = k_ref[:, h, :].astype(jnp.bfloat16)          # (tk, hd)
        vh = v_ref[:, h, :].astype(jnp.bfloat16)          # (tk, hd)

        # s = q @ k^T with explicit contraction dims (no materialized K transpose).
        s = jax.lax.dot_general(qh, kh, (((1,), (1,)), ((), ())),
                                preferred_element_type=jnp.float32)     # (tq, tk) f32
        if needs_kv_mask:
            s = jnp.where(row_mask, s, -jnp.inf)
            vh = jnp.where(col_mask, vh, jnp.zeros_like(vh))

        m_prev = m_sc[h]                                                 # (tq, 1)
        m_new = jnp.maximum(m_prev, jnp.max(s, axis=-1, keepdims=True))
        alpha = jnp.exp(m_prev - m_new)
        # TODO(synk): on v6e/v7x, if profiling shows the EUP exp path binding, compute
        # p in bfloat16 (keep l/acc accumulation in f32); do NOT apply on v5e.
        p = jnp.exp(s - m_new)                                           # (tq, tk) f32

        l_sc[h] = alpha * l_sc[h] + jnp.sum(p, axis=-1, keepdims=True)
        acc_sc[h] = alpha * acc_sc[h] + jax.lax.dot_general(
            p.astype(jnp.bfloat16), vh, (((1,), (0,)), ((), ())),
            preferred_element_type=jnp.float32)
        m_sc[h] = m_new

    @pl.when(kv == pl.num_programs(2) - 1)
    def _finalize():
        # Assemble the lane-dense (tq, nH*hd) output once per (b, qi) tile.
        for h in range(num_heads):
            inv_l = pl.reciprocal(l_sc[h], approx=False)                 # (tq, 1)
            o_ref[:, h * head_dim:(h + 1) * head_dim] = (
                acc_sc[h] * inv_l).astype(o_ref.dtype)


def attention_pallas(q5, qkv5, num_heads, head_dim, *,
                     max_q_tile=256, max_kv_tile=512, kv_buffers=2):
    """q5:   (B, Lq, G, nH, hd)  -- q at index 0 along axis 2 (G=1 pooled, G=3 unpooled),
                                    already pre-scaled by 1/sqrt(hd) (folded into qkv_w).
       qkv5: (B, Lk, 3, nH, hd)  -- k at index 1, v at index 2.
       returns (B, Lq, nH*hd), heads concatenated along the last (lane) dim."""
    B, Lq = q5.shape[0], q5.shape[1]
    Lk = qkv5.shape[1]
    dim_out = num_heads * head_dim

    # q tile: whole Lq if it fits, else a multiple-of-16 tile (bf16 sublane packing) with
    # a Pallas-masked tail.
    tq = Lq if Lq <= max_q_tile else max(16, max_q_tile - max_q_tile % 16)
    # Feed both v7x TensorCores: >=2 parallel blocks over (B, Lq/tq).
    while B * _cdiv(Lq, tq) < 2 and tq % 32 == 0 and tq >= 32:
        tq //= 2
    # kv tile: whole Lk if it fits, else a multiple of 128 (lane dim of the scores and
    # contraction dim of p@v); the non-dividing tail is masked inside the kernel.
    tk = Lk if Lk <= max_kv_tile else min(Lk, max(128, max_kv_tile - max_kv_tile % 128))
    needs_kv_mask = (Lk % tk) != 0

    kernel = functools.partial(
        _attn_kernel, num_heads=num_heads, head_dim=head_dim,
        kv_len=Lk, block_kv=tk, needs_kv_mask=needs_kv_mask)

    # TODO(synk): on v5e, if the strided K/V fetch shows up as exposed DMA, call with
    # kv_buffers=3 and/or emit qkv as (3, B*L, dim_out) from the qkv projection.
    kv_kwargs = {} if kv_buffers == 2 else {"pipeline_mode": pl.Buffered(kv_buffers)}

    return pl.pallas_call(
        kernel,
        out_shape=jax.ShapeDtypeStruct((B, Lq, dim_out), q5.dtype),
        grid=(B, _cdiv(Lq, tq), _cdiv(Lk, tk)),
        in_specs=[
            pl.BlockSpec((None, tq, None, num_heads, head_dim),
                         lambda b, qi, kv: (b, qi, 0, 0, 0)),
            pl.BlockSpec((None, tk, None, num_heads, head_dim),
                         lambda b, qi, kv: (b, kv, 1, 0, 0), **kv_kwargs),
            pl.BlockSpec((None, tk, None, num_heads, head_dim),
                         lambda b, qi, kv: (b, kv, 2, 0, 0), **kv_kwargs),
        ],
        out_specs=pl.BlockSpec((None, tq, dim_out), lambda b, qi, kv: (b, qi, 0)),
        scratch_shapes=[
            pltpu.VMEM((num_heads, tq, 1), jnp.float32),         # running max
            pltpu.VMEM((num_heads, tq, 1), jnp.float32),         # running denom
            pltpu.VMEM((num_heads, tq, head_dim), jnp.float32),  # head-major accumulator
        ],
        compiler_params=pltpu.CompilerParams(
            dimension_semantics=("parallel", "parallel", "arbitrary"),
        ),
    )(q5, qkv5, qkv5)


# ---------------------------------------------------------------------------
# MultiScaleAttention forward (Pallas-backed)
# ---------------------------------------------------------------------------
def multi_scale_attention(x, params, num_heads, q_pool_stride=None,
                          max_q_tile=256, max_kv_tile=512):
    """x: (B, H, W, dim) NHWC. Returns (B, H', W', dim_out)."""
    B, H, W, dim = x.shape
    dim_out = params["qkv_w"].shape[1] // 3
    head_dim = dim_out // num_heads
    L = H * W

    # Fold the 1/sqrt(head_dim) attention scale into the q columns of the qkv projection
    # (zero runtime cost on the activations; commutes with the positive-valued max-pool).
    scale = 1.0 / math.sqrt(head_dim)
    qkv_w = params["qkv_w"].at[:, :dim_out].multiply(scale)
    qkv_b = params["qkv_b"].at[:dim_out].multiply(scale)

    # qkv = self.qkv(x)  -- tiled bf16-MXU Pallas matmul
    qkv = linear_pallas(x.reshape(B * L, dim), qkv_w, qkv_b)
    qkv5 = qkv.reshape(B, L, 3, num_heads, head_dim)   # free reshape (contiguous)

    if q_pool_stride is not None:
        # TODO(synk): the PyTorch module takes an arbitrary q_pool nn.Module; HieraDet
        # uses MaxPool2d(kernel=s, stride=s), which is what is implemented here.
        s = q_pool_stride
        q = qkv5[:, :, 0].reshape(B, H, W, num_heads, head_dim)
        Hp, Wp = H // s, W // s
        q = q.reshape(B, Hp, s, Wp, s, num_heads, head_dim).max(axis=(2, 4))
        H, W = Hp, Wp
        Lq = H * W
        q5 = q.reshape(B, Lq, 1, num_heads, head_dim)
    else:
        Lq = L
        q5 = qkv5  # q is slab 0 of the qkv axis; the BlockSpec selects it, no copy

    # scaled-dot-product attention -- flash-style Pallas kernel, lane-dense output
    o = attention_pallas(q5, qkv5, num_heads, head_dim,
                         max_q_tile=max_q_tile, max_kv_tile=max_kv_tile)  # (B, Lq, dim_out)

    # x = self.proj(x)  -- tiled bf16-MXU Pallas matmul
    out = linear_pallas(o.reshape(B * Lq, dim_out), params["proj_w"], params["proj_b"])
    return out.reshape(B, H, W, dim_out)


# ---------------------------------------------------------------------------
# Pure-JAX reference (for correctness check; true f32 module semantics)
# ---------------------------------------------------------------------------
def multi_scale_attention_ref(x, params, num_heads, q_pool_stride=None):
    B, H, W, dim = x.shape
    dim_out = params["qkv_w"].shape[1] // 3
    head_dim = dim_out // num_heads
    L = H * W

    qkv = x.reshape(B * L, dim) @ params["qkv_w"] + params["qkv_b"]
    qkv = qkv.reshape(B, L, 3, num_heads, head_dim)
    q, k, v = qkv[:, :, 0], qkv[:, :, 1], qkv[:, :, 2]

    if q_pool_stride is not None:
        s = q_pool_stride
        qh = q.reshape(B, H, W, dim_out)
        Hp, Wp = H // s, W // s
        qh = qh.reshape(B, Hp, s, Wp, s, dim_out).max(axis=(2, 4))
        H, W = Hp, Wp
        q = qh.reshape(B, H * W, num_heads, head_dim)

    Lq = H * W
    qt = q.transpose(0, 2, 1, 3)
    kt = k.transpose(0, 2, 1, 3)
    vt = v.transpose(0, 2, 1, 3)
    scale = 1.0 / math.sqrt(head_dim)
    s_ = jnp.einsum("bhqd,bhkd->bhqk", qt, kt) * scale
    p = jax.nn.softmax(s_, axis=-1)
    o = jnp.einsum("bhqk,bhkd->bhqd", p, vt)
    o = o.transpose(0, 2, 1, 3).reshape(B * Lq, dim_out)
    out = o @ params["proj_w"] + params["proj_b"]
    return out.reshape(B, H, W, dim_out)


# ---------------------------------------------------------------------------
# Parameter init (deterministic, mimics nn.Linear shapes)
# ---------------------------------------------------------------------------
def init_params(key, dim, dim_out):
    k1, k2, k3, k4 = jax.random.split(key, 4)
    lim_qkv = 1.0 / math.sqrt(dim)
    lim_proj = 1.0 / math.sqrt(dim_out)
    return {
        # stored as (in, out) so forward is x @ W + b (PyTorch stores (out, in), does x @ W.T)
        "qkv_w": jax.random.uniform(k1, (dim, dim_out * 3), jnp.float32, -lim_qkv, lim_qkv),
        "qkv_b": jax.random.uniform(k2, (dim_out * 3,), jnp.float32, -lim_qkv, lim_qkv),
        "proj_w": jax.random.uniform(k3, (dim_out, dim_out), jnp.float32, -lim_proj, lim_proj),
        "proj_b": jax.random.uniform(k4, (dim_out,), jnp.float32, -lim_proj, lim_proj),
    }


if __name__ == "__main__":
    key = jax.random.PRNGKey(0)
    k_x, k_p = jax.random.split(key)

    B, H, W = 2, 12, 12
    dim, dim_out, num_heads = 32, 64, 2

    x = jax.random.normal(k_x, (B, H, W, dim), dtype=jnp.float32)
    params = init_params(k_p, dim, dim_out)

    # (q_pool_stride, attention tile overrides) -- small tiles force the multi-block
    # online-softmax path and (with L=144 vs a 128-wide kv tile) the masked kv tail.
    configs = [
        (None, {}),                                       # single q / kv block
        (2, {}),                                          # pooled q, single block
        (None, {"max_q_tile": 64, "max_kv_tile": 128}),   # 3 q-blocks (tail) x 2 kv-blocks (masked tail)
        (2, {"max_q_tile": 16, "max_kv_tile": 128}),      # pooled q, tiled + masked kv tail
    ]

    ok = True
    for q_pool_stride, tiles in configs:
        out = jax.block_until_ready(
            multi_scale_attention(x, params, num_heads, q_pool_stride=q_pool_stride, **tiles)
        )
        ref = multi_scale_attention_ref(x, params, num_heads, q_pool_stride=q_pool_stride)
        assert out.shape == ref.shape, (out.shape, ref.shape)
        max_err = float(jnp.max(jnp.abs(out - ref)))
        mean_err = float(jnp.mean(jnp.abs(out - ref)))
        # bf16-MXU kernel vs. pure-f32 reference: allow bf16-sized rounding error.
        if max_err > 2e-2 or mean_err > 3e-3:
            ok = False
            print(f"mismatch (q_pool_stride={q_pool_stride}, tiles={tiles}): "
                  f"max={max_err:.3e} mean={mean_err:.3e}")

    if ok:
        print("KERNEL_OK")
</pallas_src>

<mosaic_0001>
module attributes {stable_mosaic.version = 11 : i64} {
  func.func @_linear_kernel_f32(%arg0: i32, %arg1: i32, %arg2: i32, %arg3: memref<144x32xf32, #tpu.memory_space<vmem>>, %arg4: memref<32x192xf32, #tpu.memory_space<vmem>>, %arg5: memref<1x192xf32, #tpu.memory_space<vmem>>, %arg6: memref<144x192xf32, #tpu.memory_space<vmem>>) attributes {dimension_semantics = [#tpu.dimension_semantics<parallel>, #tpu.dimension_semantics<parallel>, #tpu.dimension_semantics<arbitrary>], iteration_bounds = array<i64: 2, 1, 1>, scalar_prefetch = 0 : i64, scratch_operands = 0 : i64, tpu.core_type = #tpu.core_type<tc>, window_params = [{transform_indices = @transform_0, window_bounds = array<i64: 144, 32>}, {transform_indices = @transform_1, window_bounds = array<i64: 32, 192>}, {transform_indices = @transform_2, window_bounds = array<i64: 1, 192>}, {transform_indices = @transform_3, window_bounds = array<i64: 144, 192>}]} {
    %c0_i32 = arith.constant 0 : i32
    %0 = arith.cmpi eq, %arg2, %c0_i32 : i32
    %1 = arith.extui %0 : i1 to i32
    %c0_i32_0 = arith.constant 0 : i32
    %2 = arith.cmpi ne, %1, %c0_i32_0 : i32
    scf.if %2 {
      %c0_8 = arith.constant 0 : index
      %c0_9 = arith.constant 0 : index
      %11 = vector.load %arg5[%c0_8, %c0_9] : memref<1x192xf32, #tpu.memory_space<vmem>>, vector<1x192xf32>
      %12 = vector.shape_cast %11 : vector<1x192xf32> to vector<1x192xf32>
      %13 = vector.broadcast %12 : vector<1x192xf32> to vector<144x192xf32>
      %c0_10 = arith.constant 0 : index
      %c0_11 = arith.constant 0 : index
      %14 = vector.load %arg6[%c0_10, %c0_11] : memref<144x192xf32, #tpu.memory_space<vmem>>, vector<144x192xf32>
      tpu.vector_store %arg6[%c0_10, %c0_11], %13 {strides = array<i32>} : memref<144x192xf32, #tpu.memory_space<vmem>>, vector<144x192xf32>,
    } else {
    }
    %c0 = arith.constant 0 : index
    %c0_1 = arith.constant 0 : index
    %3 = vector.load %arg6[%c0, %c0_1] : memref<144x192xf32, #tpu.memory_space<vmem>>, vector<144x192xf32>
    %c0_2 = arith.constant 0 : index
    %c0_3 = arith.constant 0 : index
    %4 = vector.load %arg3[%c0_2, %c0_3] : memref<144x32xf32, #tpu.memory_space<vmem>>, vector<144x32xf32>
    %5 = arith.truncf %4 : vector<144x32xf32> to vector<144x32xbf16>
    %c0_4 = arith.constant 0 : index
    %c0_5 = arith.constant 0 : index
    %6 = vector.load %arg4[%c0_4, %c0_5] : memref<32x192xf32, #tpu.memory_space<vmem>>, vector<32x192xf32>
    %7 = arith.truncf %6 : vector<32x192xf32> to vector<32x192xbf16>
    %cst = arith.constant dense<0.000000e+00> : vector<144x192xf32>
    %8 = tpu.matmul %5, %7, %cst {dimension_numbers = #tpu.dot_dimension_numbers<[1], [0], [0], [1], [0, 0, 1, 1], [], []>} : vector<144x32xbf16>, vector<32x192xbf16>, vector<144x192xf32> -> vector<144x192xf32>
    %9 = arith.addf %3, %8 : vector<144x192xf32>
    %c0_6 = arith.constant 0 : index
    %c0_7 = arith.constant 0 : index
    %10 = vector.load %arg6[%c0_6, %c0_7] : memref<144x192xf32, #tpu.memory_space<vmem>>, vector<144x192xf32>
    tpu.vector_store %arg6[%c0_6, %c0_7], %9 {strides = array<i32>} : memref<144x192xf32, #tpu.memory_space<vmem>>, vector<144x192xf32>,
    return
  }
  func.func @transform_0(%arg0: i32, %arg1: i32, %arg2: i32) -> (i32, i32) {
    %c0_i32 = arith.constant 0 : i32
    return %arg0, %arg2 : i32, i32
  }
  func.func @transform_1(%arg0: i32, %arg1: i32, %arg2: i32) -> (i32, i32) {
    %c0_i32 = arith.constant 0 : i32
    return %arg2, %arg1 : i32, i32
  }
  func.func @transform_2(%arg0: i32, %arg1: i32, %arg2: i32) -> (i32, i32) {
    %c0_i32 = arith.constant 0 : i32
    %c0_i32_0 = arith.constant 0 : i32
    return %c0_i32, %arg1 : i32, i32
  }
  func.func @transform_3(%arg0: i32, %arg1: i32, %arg2: i32) -> (i32, i32) {
    %c0_i32 = arith.constant 0 : i32
    return %arg0, %arg1 : i32, i32
  }
}

</mosaic_0001>

<bundles_post_ra>
// kernel: tpu_custom_call.1
= control target key start
LH: loop header
LB: loop body
LE: loop exit
PB: predicated region body
PF: predicated region fallthrough
CT: control target
= control target key end

     0   :  { %8 = vsyncpa [#allocation3], 0  ;;  %s1243_s0 = inlined_call_operand.vmem [shape: f32[288,32], index: 0, kind: input, shape index: {}]   ;;  %s1244_s1 = inlined_call_operand.vmem [shape: f32[32,192], index: 1, kind: input, shape index: {}]   ;;  %s1245_s2 = inlined_call_operand.vmem [shape: f32[1,192], index: 2, kind: input, shape index: {}]   ;;  %s1246_s3 = inlined_call_operand.hbm [shape: f32[288,192], index: 3, kind: output, shape index: {}]  }
   0x1   :  { %10 = vsyncpa [#allocation3 + $0x1], 0  ;;  %s938_s12 = smov 0   ;;  %s940_s13 = smov 0  }
   0x2   :  { %s942_s14 = smov 0   ;;  %s944_s15 = smov 0  }
   0x3   :  { %s946_s16 = smov 0   ;;  %s948_s17 = smov 0  }
   0x4 LB: > { %s747_s18 = sadd.s32 4294967295, %s912_s17   ;;  %s748_s19 = sadd.s32 4294967294, %s912_s17   ;;  %s912_s17 = sphi %s948_s17, %s16_s17   ;;  %s908_s16 = sphi %s946_s16, %s1253_s16   ;;  %s904_s15 = sphi %s944_s15, %s1252_s15   ;;  %s900_s14 = sphi %s942_s14, %s1251_s14   ;;  %s896_s13 = sphi %s940_s13, %s1250_s13   ;;  %s892_s12 = sphi %s938_s12, %s1249_s12  }
   0x5   : > { %s35_s20 = sadd.s32 1, %s908_s16  ;;  %s126_s21 = sadd.s32 1, %s900_s14 }
   0x6   : > { %p37_p0 = scmp.ge.s32.totalorder %s35_s20, 2  ;;  %p136_p1 = scmp.ne.s32.totalorder %s900_s14, %s896_s13 }
   0x7   : > { %p137_p2 = scmp.eq.s32.totalorder %s747_s18, 1  ;;  %p142_p3 = scmp.ne.s32.totalorder %s896_s13, %s892_s12 }
   0x8   : > { %s1255_s20 = smov (%p37_p0, %s35_s20), 0  ;;  %p143_p5 = scmp.eq.s32.totalorder %s748_s19, 1 }
   0x9   : > { %p978_p4 = por %p137_p2, %p136_p1  ;;  %s121_s23 = ssub.s32 %s908_s16, %s1255_s20 }
   0xa   : > { %p753_p6 = scmp.ge.s32.totalorder %s912_s17, 1  ;;  %p124_p7 = scmp.eq.s32.totalorder %s121_s23, 0 }
   0xb   : > { %p985_p8 = por %p143_p5, %p142_p3  ;;  %p196_p9 = scmp.lt.s32.totalorder %s912_s17, 3 }
   0xc   : > { %s991_s25 = scalar_select %p124_p7, %s900_s14, %s126_s21  }
   0xd   : > { %p197_p10 = pnand %p753_p6, %p196_p9 }
   0xe   : > { %v383_v0 = vld [vmem:[%s1244_s1 + $0x8] sm:$0xff] (!%p197_p10)  ;;  %v385_v1 = vld [vmem:[%s1244_s1 + $0x18] sm:$0xff] (!%p197_p10)  ;;  %v382_v2 = vld [vmem:[%s1244_s1] sm:$0xff] (!%p197_p10)  ;;  %s237_s5 = smul.u32 (!%p197_p10), 18, %s904_s15  ;;  %v914_v7 = vmov (!%p197_p10), 0   ;;  %vm394_vm0 = vcmask (!%p197_p10), 261120   ;;  %v272_v40 = vlaneseq (!%p197_p10) }
   0xf   : > { %200 = sbr.rel (%p197_p10) target bundleno = 292 (0x124), region = 32  ;;  %v391_v3 = vpack.c.bf16 (!%p197_p10), %v385_v1, %v383_v0  ;;  %v384_v4 = vld [vmem:[%s1244_s1 + $0x10] sm:$0xff] (!%p197_p10)  ;;  %v387_v5 = vld [vmem:[%s1244_s1 + $0x28] sm:$0xff] (!%p197_p10)  ;;  %v389_v6 = vld [vmem:[%s1244_s1 + $0x38] sm:$0xff] (!%p197_p10)  ;;  %454 = vmatprep.mubr.bf16.mxu0 (!%p197_p10), %v914_v7  ;;  %504 = vmatprep.mubr.bf16.mxu1 (!%p197_p10), %v914_v7  ;;  %s234_s30 = sand.u32 (!%p197_p10), 1, %s896_s13   ;;  %vm283_vm1 = vcmask (!%p197_p10), 523264  }
  0x10   : > { %v390_v8 = vpack.c.bf16 (!%p197_p10), %v384_v4, %v382_v2  ;;  %v393_v9 = vpack.c.bf16 (!%p197_p10), %v389_v6, %v387_v5  ;;  %v386_v10 = vld [vmem:[%s1244_s1 + $0x20] sm:$0xff] (!%p197_p10)  ;;  %v388_v11 = vld [vmem:[%s1244_s1 + $0x30] sm:$0xff] (!%p197_p10)  ;;  %p238_p11 = scmp.lt.s32.totalorder (!%p197_p10), %s237_s5, 35  ;;  %v273_v41 = vshrl.u32 (!%p197_p10), %v272_v40, 7  ;;  %s775_s4 = smul.u32 (!%p197_p10), 288, %s234_s30 }
  0x11   : > { %422 = vmatprep.subr.bf16.mxu0 (!%p197_p10), %v391_v3  ;;  %771 = vmatprep.subr.bf16.mxu1 (!%p197_p10), %v391_v3  ;;  %v392_v12 = vpack.c.bf16 (!%p197_p10), %v388_v11, %v386_v10  ;;  %v270_v42 = vld [vmem:[%s1245_s2] sm:$0x3] (!%p197_p10)  ;;  %s770_s8 = smul.u32 (!%p197_p10), 4608, %s904_s15  ;;  %s1197_s15 = scalar_lea.sflag (!%p197_p10), [#allocation3], %s234_s30 }
  0x12   : > { %423 = vmatpush1.bf16.msra.mxu0 (!%p197_p10), %v390_v8  ;;  %773 = vmatpush1.bf16.msra.mxu1 (!%p197_p10), %v390_v8  ;;  %v278_v43 = vsub.s32 (!%p197_p10), 1, %v273_v41  ;;  %s1056_s7 = scalar_lea.vmem (!%p197_p10), [#allocation2], %s775_s4  ;;  %v274_v45 = vsub.s32 (!%p197_p10), 0, %v273_v41  ;;  %s915_s21 = smov (!%p197_p10), [#allocation2]  }
  0x13   : > { %424 = vmatprep.subr.bf16.mxu0 (!%p197_p10), %v393_v9  ;;  %772 = vmatprep.subr.bf16.mxu1 (!%p197_p10), %v393_v9  ;;  %s635_s9 = sshll.u32 (!%p197_p10), %s1056_s7, 4  ;;  %s1186_s18 = scalar_lea.hbm (!%p197_p10), %s1246_s3, %s770_s8  ;;  %s1188_s9 = int_to_ptr.vmem [resolvable:$true] %s635_s9 }
  0x14   : > { %v279_v44 = vrot.slane (!%p197_p10), %v270_v42, %v278_v43  ;;  %v1094_v46 = vrot.slane (!%p197_p10), %v270_v42, %v274_v45  ;;  %s834_s19 = scalar_lea.vmem (!%p197_p10), %s1188_s9, 4608  ;;  %s838_s23 = sshll.u32 (!%p197_p10), %s915_s21, 4  ;;  %s839_s23 = int_to_ptr.vmem [resolvable:$false] %s838_s23 }
  0x15   : > { %p835_p12 = scmp.ne.s32.totalorder (!%p197_p10), %s1188_s9, %s834_s19  ;;  %p841_p1 = scmp.lt.s32.totalorder (!%p197_p10), %s1188_s9, %s839_s23 }
  0x16   : > { %s1257_s5 = smov (!%p238_p11, %s237_s5), 35  ;;  %425 = vmatpush1.bf16.msra.mxu0 %v392_v12  ;;  %774 = vmatpush1.bf16.msra.mxu1 %v392_v12  ;;  %284 = vst.msk [vmem:[%s1056_s7 + $0x8] sm:$0xff] %vm283_vm1, %v279_v44  ;;  %286 = vst.msk [vmem:[%s1056_s7 + $0x18] sm:$0xff] %vm283_vm1, %v279_v44 }
  0x17   : > { %s754_s26 = sshll.u32 %s1257_s5, 3  ;;  %288 = vst.msk [vmem:[%s1056_s7 + $0x28] sm:$0xff] %vm283_vm1, %v279_v44  ;;  %290 = vst.msk [vmem:[%s1056_s7 + $0x38] sm:$0xff] %vm283_vm1, %v279_v44  ;;  %p836_p13 = pnand %p835_p12, %p978_p4 }
  0x18   : > { %s1021_s29 = scalar_lea.vmem %s1243_s0, %s754_s26  ;;  %292 = vst.msk [vmem:[%s1056_s7 + $0x48] sm:$0xff] %vm283_vm1, %v279_v44  ;;  %294 = vst.msk [vmem:[%s1056_s7 + $0x58] sm:$0xff] %vm283_vm1, %v279_v44  ;;  %s840_s26 = scalar_lea.vmem %s839_s23, 9216 }
  0x19   : > { %v355_v13 = vld [vmem:[%s1021_s29] sm:$0xff]  ;;  %v356_v14 = vld [vmem:[%s1021_s29 + $0x8] sm:$0xff]  ;;  %v365_v15 = vld [vmem:[%s1021_s29 + $0x50] sm:$0xff]  ;;  %296 = vst.msk [vmem:[%s1056_s7 + $0x68] sm:$0xff] %vm283_vm1, %v279_v44  ;;  %p837_p0 = pneg %p836_p13  ;;  %p842_p2 = scmp.lt.s32.totalorder %s840_s26, %s834_s19 }
  0x1a   : > { %v373_v16 = vpack.c.bf16 %v356_v14, %v355_v13  ;;  %v366_v17 = vld [vmem:[%s1021_s29 + $0x58] sm:$0xff]  ;;  %v357_v19 = vld [vmem:[%s1021_s29 + $0x10] sm:$0xff]  ;;  %v367_v21 = vld [vmem:[%s1021_s29 + $0x60] sm:$0xff]  ;;  %298 = vst.msk [vmem:[%s1056_s7 + $0x78] sm:$0xff] %vm283_vm1, %v279_v44 }
  0x1b   : > { %v378_v18 = vpack.c.bf16 %v366_v17, %v365_v15  ;;  %v358_v20 = vld [vmem:[%s1021_s29 + $0x18] sm:$0xff]  ;;  %v368_v22 = vld [vmem:[%s1021_s29 + $0x68] sm:$0xff]  ;;  %v359_v25 = vld [vmem:[%s1021_s29 + $0x20] sm:$0xff]  ;;  %300 = vst.msk [vmem:[%s1056_s7 + $0x88] sm:$0xff] %vm283_vm1, %v279_v44  ;;  %p843_p3 = por %p842_p2, %p841_p1 }
  0x1c   : > { %755 = vmatmul.mubr.msk.bf16.vlgmr.msra.gmra.mrb[0].mxu0 %vm394_vm0, %v373_v16  ;;  %v374_v23 = vpack.c.bf16 %v358_v20, %v357_v19  ;;  %v379_v24 = vpack.c.bf16 %v368_v22, %v367_v21  ;;  %v360_v26 = vld [vmem:[%s1021_s29 + $0x28] sm:$0xff]  ;;  %v369_v27 = vld [vmem:[%s1021_s29 + $0x70] sm:$0xff]  ;;  %v370_v28 = vld [vmem:[%s1021_s29 + $0x78] sm:$0xff]  ;;  %302 = vst.msk [vmem:[%s1056_s7 + $0x98] sm:$0xff] %vm283_vm1, %v279_v44 }
  0x1d   : > { %760 = vmatmul.mubr.msk.bf16.vlgmr.msra.gmra.mrb[0].mxu1 %vm394_vm0, %v378_v18  ;;  %464 = vmatprep.mubr.bf16.mxu0 %v914_v7  ;;  %v375_v29 = vpack.c.bf16 %v360_v26, %v359_v25  ;;  %v380_v30 = vpack.c.bf16 %v370_v28, %v369_v27  ;;  %v361_v31 = vld [vmem:[%s1021_s29 + $0x30] sm:$0xff]  ;;  %v362_v32 = vld [vmem:[%s1021_s29 + $0x38] sm:$0xff]  ;;  %v371_v33 = vld [vmem:[%s1021_s29 + $0x80] sm:$0xff]  ;;  %304 = vst.msk [vmem:[%s1056_s7 + $0xa8] sm:$0xff] %vm283_vm1, %v279_v44  ;;  %p844_p5 = pnand %p843_p3, %p837_p0 }
  0x1e   : > { %514 = vmatprep.mubr.bf16.mxu1 %v914_v7  ;;  %v372_v34 = vld [vmem:[%s1021_s29 + $0x88] sm:$0xff]  ;;  %v376_v35 = vpack.c.bf16 %v362_v32, %v361_v31  ;;  %v363_v37 = vld [vmem:[%s1021_s29 + $0x40] sm:$0xff]  ;;  %306 = vst.msk [vmem:[%s1056_s7 + $0xb8] sm:$0xff] %vm283_vm1, %v279_v44  ;;  %308 = vst.msk [vmem:[%s1056_s7 + $0xc8] sm:$0xff] %vm283_vm1, %v279_v44 }
  0x1f   : > { %v381_v36 = vpack.c.bf16 %v372_v34, %v371_v33  ;;  %v364_v38 = vld [vmem:[%s1021_s29 + $0x48] sm:$0xff]  ;;  %310 = vst.msk [vmem:[%s1056_s7 + $0xd8] sm:$0xff] %vm283_vm1, %v279_v44  ;;  %312 = vst.msk [vmem:[%s1056_s7 + $0xe8] sm:$0xff] %vm283_vm1, %v279_v44  ;;  %v322_v52 = vld [vmem:[%s1056_s7 + $0x18] sm:$0xff] }
  0x20   : > { %v377_v39 = vpack.c.bf16 %v364_v38, %v363_v37  ;;  %314 = vst.msk [vmem:[%s1056_s7 + $0xf8] sm:$0xff] %vm283_vm1, %v279_v44  ;;  %316 = vst.msk [vmem:[%s1056_s7 + $0x108] sm:$0xff] %vm283_vm1, %v279_v44  ;;  %v320_v47 = vld [vmem:[%s1056_s7 + $0x8] sm:$0xff]  ;;  %v326_v8 = vld [vmem:[%s1056_s7 + $0x38] sm:$0xff] }
  0x21   : > { %318 = vst.msk [vmem:[%s1056_s7 + $0x118] sm:$0xff] %vm283_vm1, %v279_v44  ;;  %v324_v3 = vld [vmem:[%s1056_s7 + $0x28] sm:$0xff]  ;;  %v330_v28 = vld [vmem:[%s1056_s7 + $0x58] sm:$0xff] }
  0x22   : > { %v332_v43 = vld [vmem:[%s1056_s7 + $0x68] sm:$0xff] }
  0x24   : > { %756 = vmatmul.mubr.msk.bf16.gmra.mrb[4].mxu0 %vm394_vm0, %v374_v23  ;;  %v340_v49 = vld [vmem:[%s1056_s7 + $0xa8] sm:$0xff] }
  0x25   : > { %761 = vmatmul.mubr.msk.bf16.gmra.mrb[4].mxu1 %vm394_vm0, %v379_v24  ;;  %474 = vmatprep.mubr.bf16.mxu0 %v914_v7  ;;  %v342_v58 = vld [vmem:[%s1056_s7 + $0xb8] sm:$0xff]  ;;  %v344_v5 = vld [vmem:[%s1056_s7 + $0xc8] sm:$0xff] }
  0x26   : > { %524 = vmatprep.mubr.bf16.mxu1 %v914_v7  ;;  %v346_v14 = vld [vmem:[%s1056_s7 + $0xd8] sm:$0xff]  ;;  %v328_v23 = vld [vmem:[%s1056_s7 + $0x48] sm:$0xff] }
  0x27   : > { %v348_v25 = vld [vmem:[%s1056_s7 + $0xe8] sm:$0xff]  ;;  %v350_v34 = vld [vmem:[%s1056_s7 + $0xf8] sm:$0xff] }
  0x28   : > { %v352_v45 = vld [vmem:[%s1056_s7 + $0x108] sm:$0xff] }
  0x2c   : > { %757 = vmatmul.mubr.msk.bf16.gmra.mrb[8].mxu0 %vm394_vm0, %v375_v29 }
  0x2d   : > { %762 = vmatmul.mubr.msk.bf16.gmra.mrb[8].mxu1 %vm394_vm0, %v380_v30  ;;  %484 = vmatprep.mubr.bf16.mxu0 %v914_v7 }
  0x2e   : > { %534 = vmatprep.mubr.bf16.mxu1 %v914_v7 }
  0x34   : > { %758 = vmatmul.mubr.msk.bf16.gmra.mrb[12].mxu0 %vm394_vm0, %v376_v35 }
  0x35   : > { %763 = vmatmul.mubr.msk.bf16.gmra.mrb[12].mxu1 %vm394_vm0, %v381_v36  ;;  %494 = vmatprep.mubr.bf16.mxu0 %v914_v7 }
  0x3c   : > { %759 = vmatmul.mubr.msk.bf16.gmra.mrb[16].mxu0 %vm394_vm0, %v377_v39 }
  0xef   : > { %v456_v48 = vpop.f32.mrb[0].mxu0 }
  0xf0   : > { %v545_v50 = vadd.f32 %v456_v48, %v1094_v46  ;;  %v458_v51 = vpop.f32.mrb[1].mxu0  ;;  %v506_v53 = vpop.f32.mrb[0].mxu1 }
  0xf1   : > { %v546_v54 = vadd.f32 %v458_v51, %v320_v47  ;;  %v460_v55 = vpop.f32.mrb[2].mxu0  ;;  %v565_v56 = vadd.f32 %v506_v53, %v1094_v46  ;;  %v508_v57 = vpop.f32.mrb[1].mxu1 }
  0xf2   : > { %581 = vst [vmem:[%s1056_s7] sm:$0xff] %v545_v50  ;;  %v547_v59 = vadd.f32 %v460_v55, %v1094_v46  ;;  %v462_v60 = vpop.f32.mrb[3].mxu0  ;;  %v566_v61 = vadd.f32 %v508_v57, %v340_v49  ;;  %v510_v62 = vpop.f32.mrb[2].mxu1  ;;  %v334_v49 = vld [vmem:[%s1056_s7 + $0x78] sm:$0xff] }
  0xf3   : > { %583 = vst.msk [vmem:[%s1056_s7 + $0x8] sm:$0xff] %vm283_vm1, %v546_v54  ;;  %v548_v63 = vadd.f32 %v462_v60, %v322_v52  ;;  %602 = vst [vmem:[%s1056_s7 + $0xa0] sm:$0xff] %v565_v56  ;;  %v567_v0 = vadd.f32 %v510_v62, %v1094_v46  ;;  %v512_v1 = vpop.f32.mrb[3].mxu1  ;;  %v354_v55 = vld [vmem:[%s1056_s7 + $0x118] sm:$0xff] }
  0xf4   : > { %584 = vst [vmem:[%s1056_s7 + $0x10] sm:$0xff] %v547_v59  ;;  %603 = vst.msk [vmem:[%s1056_s7 + $0xa8] sm:$0xff] %vm283_vm1, %v566_v61  ;;  %v568_v2 = vadd.f32 %v512_v1, %v342_v58 }
  0xf5   : > { %585 = vst.msk [vmem:[%s1056_s7 + $0x18] sm:$0xff] %vm283_vm1, %v548_v63  ;;  %604 = vst [vmem:[%s1056_s7 + $0xb0] sm:$0xff] %v567_v0  ;;  %v336_v0 = vld [vmem:[%s1056_s7 + $0x88] sm:$0xff] }
  0xf6   : > { %605 = vst.msk [vmem:[%s1056_s7 + $0xb8] sm:$0xff] %vm283_vm1, %v568_v2 }
  0xf7   : > { %v466_v4 = vpop.f32.mrb[4].mxu0 }
  0xf8   : > { %v549_v6 = vadd.f32 %v466_v4, %v1094_v46  ;;  %v468_v7 = vpop.f32.mrb[5].mxu0  ;;  %v516_v9 = vpop.f32.mrb[4].mxu1  ;;  %v338_v4 = vld [vmem:[%s1056_s7 + $0x98] sm:$0xff] }
  0xf9   : > { %v550_v10 = vadd.f32 %v468_v7, %v324_v3  ;;  %v470_v11 = vpop.f32.mrb[6].mxu0  ;;  %v569_v12 = vadd.f32 %v516_v9, %v1094_v46  ;;  %v518_v13 = vpop.f32.mrb[5].mxu1 }
  0xfa   : > { %586 = vst [vmem:[%s1056_s7 + $0x20] sm:$0xff] %v549_v6  ;;  %v551_v15 = vadd.f32 %v470_v11, %v1094_v46  ;;  %v472_v16 = vpop.f32.mrb[7].mxu0  ;;  %v570_v17 = vadd.f32 %v518_v13, %v344_v5  ;;  %v520_v18 = vpop.f32.mrb[6].mxu1 }
  0xfb   : > { %587 = vst.msk [vmem:[%s1056_s7 + $0x28] sm:$0xff] %vm283_vm1, %v550_v10  ;;  %v552_v19 = vadd.f32 %v472_v16, %v326_v8  ;;  %606 = vst [vmem:[%s1056_s7 + $0xc0] sm:$0xff] %v569_v12  ;;  %v571_v20 = vadd.f32 %v520_v18, %v1094_v46  ;;  %v522_v21 = vpop.f32.mrb[7].mxu1 }
  0xfc   : > { %588 = vst [vmem:[%s1056_s7 + $0x30] sm:$0xff] %v551_v15  ;;  %607 = vst.msk [vmem:[%s1056_s7 + $0xc8] sm:$0xff] %vm283_vm1, %v570_v17  ;;  %v572_v22 = vadd.f32 %v522_v21, %v346_v14 }
  0xfd   : > { %589 = vst.msk [vmem:[%s1056_s7 + $0x38] sm:$0xff] %vm283_vm1, %v552_v19  ;;  %608 = vst [vmem:[%s1056_s7 + $0xd0] sm:$0xff] %v571_v20 }
  0xfe   : > { %609 = vst.msk [vmem:[%s1056_s7 + $0xd8] sm:$0xff] %vm283_vm1, %v572_v22 }
  0xff   : > { %v476_v24 = vpop.f32.mrb[8].mxu0 }
 0x100   : > { %v553_v26 = vadd.f32 %v476_v24, %v1094_v46  ;;  %v478_v27 = vpop.f32.mrb[9].mxu0  ;;  %v526_v29 = vpop.f32.mrb[8].mxu1 }
 0x101   : > { %v554_v30 = vadd.f32 %v478_v27, %v328_v23  ;;  %v480_v31 = vpop.f32.mrb[10].mxu0  ;;  %v573_v32 = vadd.f32 %v526_v29, %v1094_v46  ;;  %v528_v33 = vpop.f32.mrb[9].mxu1 }
 0x102   : > { %590 = vst [vmem:[%s1056_s7 + $0x40] sm:$0xff] %v553_v26  ;;  %v555_v35 = vadd.f32 %v480_v31, %v1094_v46  ;;  %v482_v36 = vpop.f32.mrb[11].mxu0  ;;  %v574_v37 = vadd.f32 %v528_v33, %v348_v25  ;;  %v530_v38 = vpop.f32.mrb[10].mxu1 }
 0x103   : > { %591 = vst.msk [vmem:[%s1056_s7 + $0x48] sm:$0xff] %vm283_vm1, %v554_v30  ;;  %v556_v39 = vadd.f32 %v482_v36, %v330_v28  ;;  %610 = vst [vmem:[%s1056_s7 + $0xe0] sm:$0xff] %v573_v32  ;;  %v575_v40 = vadd.f32 %v530_v38, %v1094_v46  ;;  %v532_v41 = vpop.f32.mrb[11].mxu1 }
 0x104   : > { %592 = vst [vmem:[%s1056_s7 + $0x50] sm:$0xff] %v555_v35  ;;  %611 = vst.msk [vmem:[%s1056_s7 + $0xe8] sm:$0xff] %vm283_vm1, %v574_v37  ;;  %v576_v42 = vadd.f32 %v532_v41, %v350_v34 }
 0x105   : > { %593 = vst.msk [vmem:[%s1056_s7 + $0x58] sm:$0xff] %vm283_vm1, %v556_v39  ;;  %612 = vst [vmem:[%s1056_s7 + $0xf0] sm:$0xff] %v575_v40 }
 0x106   : > { %613 = vst.msk [vmem:[%s1056_s7 + $0xf8] sm:$0xff] %vm283_vm1, %v576_v42 }
 0x107   : > { %v486_v44 = vpop.f32.mrb[12].mxu0 }
 0x108   : > { %v557_v47 = vadd.f32 %v486_v44, %v1094_v46  ;;  %v488_v48 = vpop.f32.mrb[13].mxu0  ;;  %v536_v50 = vpop.f32.mrb[12].mxu1 }
 0x109   : > { %v558_v51 = vadd.f32 %v488_v48, %v332_v43  ;;  %v490_v52 = vpop.f32.mrb[14].mxu0  ;;  %v577_v53 = vadd.f32 %v536_v50, %v1094_v46  ;;  %v538_v54 = vpop.f32.mrb[13].mxu1 }
 0x10a   : > { %594 = vst [vmem:[%s1056_s7 + $0x60] sm:$0xff] %v557_v47  ;;  %v559_v56 = vadd.f32 %v490_v52, %v1094_v46  ;;  %v492_v57 = vpop.f32.mrb[15].mxu0  ;;  %v578_v58 = vadd.f32 %v538_v54, %v352_v45  ;;  %v540_v59 = vpop.f32.mrb[14].mxu1 }
 0x10b   : > { %595 = vst.msk [vmem:[%s1056_s7 + $0x68] sm:$0xff] %vm283_vm1, %v558_v51  ;;  %v560_v60 = vadd.f32 %v492_v57, %v334_v49  ;;  %614 = vst [vmem:[%s1056_s7 + $0x100] sm:$0xff] %v577_v53  ;;  %v579_v61 = vadd.f32 %v540_v59, %v1094_v46  ;;  %v542_v62 = vpop.f32.mrb[15].mxu1 }
 0x10c   : > { %596 = vst [vmem:[%s1056_s7 + $0x70] sm:$0xff] %v559_v56  ;;  %615 = vst.msk [vmem:[%s1056_s7 + $0x108] sm:$0xff] %vm283_vm1, %v578_v58  ;;  %v580_v63 = vadd.f32 %v542_v62, %v354_v55 }
 0x10d   : > { %597 = vst.msk [vmem:[%s1056_s7 + $0x78] sm:$0xff] %vm283_vm1, %v560_v60  ;;  %616 = vst [vmem:[%s1056_s7 + $0x110] sm:$0xff] %v579_v61 }
 0x10e   : > { %617 = vst.msk [vmem:[%s1056_s7 + $0x118] sm:$0xff] %vm283_vm1, %v580_v63 }
 0x10f   : > { %v496_v1 = vpop.f32.mrb[16].mxu0 }
 0x110   : > { %v561_v2 = vadd.f32 %v496_v1, %v1094_v46  ;;  %v498_v3 = vpop.f32.mrb[17].mxu0 }
 0x111   : > { %v562_v5 = vadd.f32 %v498_v3, %v336_v0  ;;  %v500_v6 = vpop.f32.mrb[18].mxu0 }
 0x112   : > { %598 = vst [vmem:[%s1056_s7 + $0x80] sm:$0xff] %v561_v2  ;;  %v563_v7 = vadd.f32 %v500_v6, %v1094_v46  ;;  %v502_v8 = vpop.f32.mrb[19].mxu0 }
 0x113   : > { %599 = vst.msk [vmem:[%s1056_s7 + $0x88] sm:$0xff] %vm283_vm1, %v562_v5  ;;  %v564_v9 = vadd.f32 %v502_v8, %v338_v4 }
 0x114   : > { %600 = vst [vmem:[%s1056_s7 + $0x90] sm:$0xff] %v563_v7 }
 0x115   : > { %601 = vst.msk [vmem:[%s1056_s7 + $0x98] sm:$0xff] %vm283_vm1, %v564_v9 }
 0x116   : > { %847 = shalt.err (!%p844_p5)
}
 0x117   : > { %s848_s27 = scalar_lea.hbm %s1186_s18, 4608  ;;  %s852_s30 = scalar_lea.hbm %s1246_s3, 9216 }
 0x118   : > { %p849_p6 = scmp.ne.s32.totalorder %s1186_s18, %s848_s27  ;;  %p853_p10 = scmp.lt.u32.totalorder %s1186_s18, %s1246_s3 }
 0x119   : > { %p854_p11 = scmp.lt.u32.totalorder %s852_s30, %s848_s27  ;;  %p856_p13 = scmp.lt.u32.totalorder %s848_s27, %s1186_s18 }
 0x11a   : > { %p850_p7 = pnand %p849_p6, %p978_p4 }
 0x11b   : > { %p855_p12 = por %p854_p11, %p853_p10 }
 0x11c   : > { %p851_p9 = pneg %p850_p7 }
 0x11d   : > { %p857_p0 = por %p856_p13, %p855_p12 }
 0x11f   : > { %p858_p1 = pnand %p857_p0, %p851_p9 }
 0x121   : > { %861 = shalt.err (!%p858_p1)
}
 0x122   : > { %s916_s6 = smov 256   ;;  %s917_s7 = smov 16  }
 0x123   : > { %776 = dma.vmem_to_hbm [thread:$0]  (%p978_p4), %s1188_s9, 4608, %s1186_s18, %s1197_s15, %s916_s6, %s916_s6, %s917_s7  }
 0x124 PF: > { %p782_p2 = scmp.ge.s32.totalorder %s912_s17, 2  ;;  %s650_s8 = sand.u32 1, %s892_s12  }
 0x125   : > { %s651_s10 = scalar_lea.sflag [#allocation3], %s650_s8 }
 0x126   : > { %p779_p3 = pnand %p782_p2, %p985_p8 }
 0x128   : > { %887 = dma.done.wait (!%p779_p3), %s651_s10, 4608  }
 0x129   : > { %889 = vsyncadd (!%p779_p3), %s651_s10, 4294962688  ;;  %s16_s17 = sadd.s32 1, %s912_s17   ;;  %s1249_s12 = smov %s896_s13 }
 0x12a   : > { %p13_p5 = scmp.ge.s32.totalorder %s16_s17, 4   ;;  %s1250_s13 = smov %s900_s14 }
 0x12b   : > { %s1251_s14 = smov %s991_s25  ;;  %s1252_s15 = smov %s908_s16 }
 0x12c   : > { %s1253_s16 = smov %s1255_s20  ;;  %15 = sbr.rel (!%p13_p5) target bundleno = 4 (0x4), region = 77 }
 0x133   :  { %656 = vsyncpa [#allocation3], 1 }
 0x134   :  { %658 = vsyncpa [#allocation3 + $0x1], 1 }

</bundles_post_ra>
